<compile_context>
chip_gen: v7x
topology: tpu7x:2x2x1
jax: 0.10.0
libtpu: 0.0.40
codegen_flags: <defaults>
</compile_context>

<pallas_src>
import functools

import jax
import jax.numpy as jnp
from jax.experimental import pallas as pl
from jax.experimental.pallas import tpu as pltpu


def _gravity_kernel(w_ref, b_ref, x_ref, o_ref):
    # w_ref: (3,)  f32 SMEM   -- nn.Linear(3,1) weight, flattened
    # b_ref: (1,)  f32 SMEM   -- nn.Linear bias
    # x_ref: (3, TILE_R, 128) f32 VMEM -- feature-major, lane+sublane dense
    # o_ref: (TILE_R, 128)    f32 VMEM -- dense output slab (unmasked vst)
    logx0 = jnp.log(x_ref[0])          # (TILE_R, 128)   EUP
    logx1 = jnp.log(x_ref[1])
    logx2 = jnp.log(x_ref[2])
    # Unrolled K=3 contraction: pure VPU, no cross-lane XLU reduce, no MXU.
    logy = (w_ref[0] * logx0
            + w_ref[1] * logx1
            + w_ref[2] * logx2) + b_ref[0]
    o_ref[...] = jnp.exp(logy)          # EUP


def _gravity_pallas(xt, w, b, tile_r, num_tiles):
    # xt: (3, R_pad, 128) float32, R_pad = num_tiles * tile_r
    r_pad = num_tiles * tile_r
    # Double-buffered input block + output block, with headroom.
    block_bytes = (3 * tile_r * 128 + tile_r * 128) * 4
    vmem_limit = int(min(max(4 * block_bytes, 16 * 1024 * 1024),
                         64 * 1024 * 1024))
    return pl.pallas_call(
        _gravity_kernel,
        out_shape=jax.ShapeDtypeStruct((r_pad, 128), jnp.float32),
        grid=(num_tiles,),
        in_specs=[
            pl.BlockSpec(memory_space=pltpu.MemorySpace.SMEM),    # weight (3,)
            pl.BlockSpec(memory_space=pltpu.MemorySpace.SMEM),    # bias   (1,)
            pl.BlockSpec((3, tile_r, 128), lambda i: (0, i, 0)),  # x slab
        ],
        out_specs=pl.BlockSpec((tile_r, 128), lambda i: (i, 0)),
        compiler_params=pltpu.CompilerParams(
            dimension_semantics=("parallel",),
            vmem_limit_bytes=vmem_limit,
        ),
    )(w, b, xt)


@functools.partial(jax.jit, static_argnames=("tile_rows",))
def gravity_forward(x, weight, bias, tile_rows=1024):
    """x: (N, 3) positive floats; weight: (1, 3); bias: (1,). Returns (N, 1)."""
    x = jnp.asarray(x, jnp.float32)
    n = x.shape[0]
    w = jnp.asarray(weight, jnp.float32).reshape(3)
    b = jnp.asarray(bias, jnp.float32).reshape(1)

    # Row blocking: each grid step owns TILE_R rows of 128 samples
    # (~2 MB/step at the default tile_rows=1024).
    r = pl.cdiv(n, 128)                          # rows of 128 samples
    tile_r = min(tile_rows, r)
    tile_r = max(8, ((tile_r + 7) // 8) * 8)     # (8,128) sublane alignment
    num_tiles = pl.cdiv(r, tile_r)
    r_pad = num_tiles * tile_r
    n_pad = r_pad * 128

    # Feature-major, fully dense (3, R_pad, 128) layout. Padding with 1.0 keeps
    # log() finite; padded samples are sliced off below. Transpose + pad +
    # reshape all live inside this jit so XLA fuses them into one HBM pass.
    # TODO(synk): if the caller can hand us x already feature-major (3, N),
    # this wrapper transpose pass disappears entirely.
    xt = jnp.pad(x.T, ((0, 0), (0, n_pad - n)), constant_values=1.0)
    xt = xt.reshape(3, r_pad, 128)

    out = _gravity_pallas(xt, w, b, tile_r, num_tiles)   # (R_pad, 128)

    # Dense (R_pad, 128) slab -> (N, 1) in sample order.
    return out.reshape(n_pad, 1)[:n]


def gravity_reference(x, weight, bias):
    logx = jnp.log(x.astype(jnp.float32))
    logy = jnp.sum(logx * weight.astype(jnp.float32).reshape(1, 3),
                   axis=-1, keepdims=True) + bias.astype(jnp.float32)
    return jnp.exp(logy)


if __name__ == "__main__":
    key = jax.random.PRNGKey(0)
    kx, kw, kb = jax.random.split(key, 3)

    # Small batch of samples with 3 strictly-positive features (log domain).
    # N is intentionally not a multiple of 128 to exercise the pad/slice path.
    N = 300
    x = jax.random.uniform(kx, (N, 3), dtype=jnp.float32, minval=0.5, maxval=4.0)

    # Deterministic init mimicking nn.Linear(3, 1)'s uniform(-1/sqrt(3), 1/sqrt(3)).
    bound = 3.0 ** -0.5
    weight = jax.random.uniform(kw, (1, 3), dtype=jnp.float32,
                                minval=-bound, maxval=bound)
    bias = jax.random.uniform(kb, (1,), dtype=jnp.float32,
                              minval=-bound, maxval=bound)

    y = gravity_forward(x, weight, bias)
    y = jax.block_until_ready(y)

    y_ref = gravity_reference(x, weight, bias)
    assert y.shape == (N, 1)
    assert jnp.allclose(y, y_ref, rtol=1e-5, atol=1e-5)

    print("KERNEL_OK")
</pallas_src>

<mosaic_0001>
module attributes {stable_mosaic.version = 11 : i64} {
  func.func @_gravity_kernel(%arg0: i32, %arg1: memref<3xf32, #tpu.memory_space<smem>>, %arg2: memref<1xf32, #tpu.memory_space<smem>>, %arg3: memref<3x8x128xf32, #tpu.memory_space<vmem>>, %arg4: memref<8x128xf32, #tpu.memory_space<vmem>>) attributes {dimension_semantics = [#tpu.dimension_semantics<parallel>], iteration_bounds = array<i64: 1>, scalar_prefetch = 0 : i64, scratch_operands = 0 : i64, tpu.core_type = #tpu.core_type<tc>, window_params = [{transform_indices = @transform_0, window_bounds = array<i64: 3>}, {transform_indices = @transform_1, window_bounds = array<i64: 1>}, {transform_indices = @transform_2, window_bounds = array<i64: 3, 8, 128>}, {transform_indices = @transform_3, window_bounds = array<i64: 8, 128>}]} {
    %c0 = arith.constant 0 : index
    %c0_0 = arith.constant 0 : index
    %c0_1 = arith.constant 0 : index
    %0 = vector.load %arg3[%c0, %c0_0, %c0_1] : memref<3x8x128xf32, #tpu.memory_space<vmem>>, vector<1x8x128xf32>
    %1 = vector.shape_cast %0 : vector<1x8x128xf32> to vector<8x128xf32>
    %2 = math.log %1 : vector<8x128xf32>
    %c1 = arith.constant 1 : index
    %c0_2 = arith.constant 0 : index
    %c0_3 = arith.constant 0 : index
    %3 = vector.load %arg3[%c1, %c0_2, %c0_3] : memref<3x8x128xf32, #tpu.memory_space<vmem>>, vector<1x8x128xf32>
    %4 = vector.shape_cast %3 : vector<1x8x128xf32> to vector<8x128xf32>
    %5 = math.log %4 : vector<8x128xf32>
    %c2 = arith.constant 2 : index
    %c0_4 = arith.constant 0 : index
    %c0_5 = arith.constant 0 : index
    %6 = vector.load %arg3[%c2, %c0_4, %c0_5] : memref<3x8x128xf32, #tpu.memory_space<vmem>>, vector<1x8x128xf32>
    %7 = vector.shape_cast %6 : vector<1x8x128xf32> to vector<8x128xf32>
    %8 = math.log %7 : vector<8x128xf32>
    %c0_6 = arith.constant 0 : index
    %9 = memref.load %arg1[%c0_6] : memref<3xf32, #tpu.memory_space<smem>>
    %10 = vector.broadcast %9 : f32 to vector<8x128xf32>
    %11 = arith.mulf %10, %2 : vector<8x128xf32>
    %c1_7 = arith.constant 1 : index
    %12 = memref.load %arg1[%c1_7] : memref<3xf32, #tpu.memory_space<smem>>
    %13 = vector.broadcast %12 : f32 to vector<8x128xf32>
    %14 = arith.mulf %13, %5 : vector<8x128xf32>
    %15 = arith.addf %11, %14 : vector<8x128xf32>
    %c2_8 = arith.constant 2 : index
    %16 = memref.load %arg1[%c2_8] : memref<3xf32, #tpu.memory_space<smem>>
    %17 = vector.broadcast %16 : f32 to vector<8x128xf32>
    %18 = arith.mulf %17, %8 : vector<8x128xf32>
    %19 = arith.addf %15, %18 : vector<8x128xf32>
    %c0_9 = arith.constant 0 : index
    %20 = memref.load %arg2[%c0_9] : memref<1xf32, #tpu.memory_space<smem>>
    %21 = vector.broadcast %20 : f32 to vector<8x128xf32>
    %22 = arith.addf %19, %21 : vector<8x128xf32>
    %23 = math.exp %22 : vector<8x128xf32>
    %c0_10 = arith.constant 0 : index
    %c0_11 = arith.constant 0 : index
    %24 = vector.load %arg4[%c0_10, %c0_11] : memref<8x128xf32, #tpu.memory_space<vmem>>, vector<8x128xf32>
    tpu.vector_store %arg4[%c0_10, %c0_11], %23 {strides = array<i32>} : memref<8x128xf32, #tpu.memory_space<vmem>>, vector<8x128xf32>,
    return
  }
  func.func @transform_0(%arg0: i32) -> i32 {
    %c0_i32 = arith.constant 0 : i32
    %c0_i32_0 = arith.constant 0 : i32
    return %c0_i32 : i32
  }
  func.func @transform_1(%arg0: i32) -> i32 {
    %c0_i32 = arith.constant 0 : i32
    %c0_i32_0 = arith.constant 0 : i32
    return %c0_i32 : i32
  }
  func.func @transform_2(%arg0: i32) -> (i32, i32, i32) {
    %c0_i32 = arith.constant 0 : i32
    %c0_i32_0 = arith.constant 0 : i32
    %c0_i32_1 = arith.constant 0 : i32
    return %c0_i32, %arg0, %c0_i32_0 : i32, i32, i32
  }
  func.func @transform_3(%arg0: i32) -> (i32, i32) {
    %c0_i32 = arith.constant 0 : i32
    %c0_i32_0 = arith.constant 0 : i32
    return %arg0, %c0_i32 : i32, i32
  }
}

</mosaic_0001>

<bundles_post_ra>
// kernel: gravity_forward.1
= control target key start
LH: loop header
LB: loop body
LE: loop exit
PB: predicated region body
PF: predicated region fallthrough
CT: control target
= control target key end

     0   :  { %9 = vsyncpa [#allocation4], 0  ;;  %s127_s0 = inlined_call_operand.vmem [shape: f32[3], index: 0, kind: input, shape index: {}]   ;;  %s128_s1 = inlined_call_operand.<no memory space> [shape: f32[1], index: 1, kind: input, shape index: {}]   ;;  %s129_s2 = inlined_call_operand.vmem [shape: f32[3,8,128], index: 2, kind: input, shape index: {}]   ;;  %s130_s3 = inlined_call_operand.vmem [shape: f32[8,128], index: 3, kind: output, shape index: {}]  }
   0x1   :  { %s16_s14 = sshll.u32 %s127_s0, 4  ;;  %s17_s14 = int_to_ptr.vmem [resolvable:$true] %s16_s14 }
   0x2   :  { %s74_s15 = scalar_lea.vmem %s17_s14, 16  ;;  %p79_p1 = scmp.lt.s32.totalorder %s17_s14, %s17_s14 }
   0x3   :  { %p75_p0 = scmp.ne.s32.totalorder %s17_s14, %s74_s15  ;;  %p80_p2 = scmp.lt.s32.totalorder %s74_s15, %s74_s15 }
   0x5   :  { %p81_p3 = por %p80_p2, %p79_p1 }
   0x7   :  { %p82_p4 = pnand %p81_p3, %p75_p0 }
   0x9   :  { %85 = shalt.err (!%p82_p4)
}
   0xa   :  { %s88_s16 = smov [#allocation3]  }
   0xb   :  { %19 = dma.vmem_to_smem %s17_s14, 16, %s88_s16, [#allocation4]  }
   0xc   :  { %86 = dma.done.wait [#allocation4], 16  }
   0xd   :  { %87 = vsyncadd [#allocation4], 4294967280 }
   0xe   :  { %27 = sfence }
   0xf   :  { %v28_v0 = vld [vmem:[%s129_s2] sm:$0xff]  ;;  %v61_v1 = vld [vmem:[%s129_s2 + $0x8] sm:$0xff]  ;;  %v62_v2 = vld [vmem:[%s129_s2 + $0x10] sm:$0xff]  ;;  %s39_s22 = sld [smem:[#allocation3]]  ;;  %s63_s23 = sld [smem:[#allocation3 + $0x1]]  ;;  %v51_v16 = vstv %s128_s1 }
  0x10   :  { %66 = vlog2.f32 %v28_v0  ;;  %s64_s24 = sld [smem:[#allocation3 + $0x2]] }
  0x11   :  { %68 = vlog2.f32 %v61_v1 }
  0x12   :  { %70 = vlog2.f32 %v62_v2 }
  0x15   :  { %v40_v4 = vstv %s39_s22  ;;  %v43_v7 = vstv %s63_s23 }
  0x16   :  { %v47_v10 = vstv %s64_s24 }
  0x1a   :  { %v67_v3 = vpop.eup %66 }
  0x1b   :  { %v69_v5 = vpop.eup %68  ;;  %v30_v6 = vmul.f32 0.6931472, %v67_v3 }
  0x1c   :  { %v71_v8 = vpop.eup %70  ;;  %v34_v9 = vmul.f32 0.6931472, %v69_v5 }
  0x1d   :  { %v38_v11 = vmul.f32 0.6931472, %v71_v8  ;;  %v41_v12 = vmul.f32 %v40_v4, %v30_v6 }
  0x1e   :  { %v44_v13 = vmul.f32 %v43_v7, %v34_v9 }
  0x1f   :  { %v48_v14 = vmul.f32 %v47_v10, %v38_v11 }
  0x20   :  { %v45_v15 = vadd.f32 %v44_v13, %v41_v12 }
  0x22   :  { %v49_v17 = vadd.f32 %v48_v14, %v45_v15 }
  0x24   :  { %v52_v18 = vadd.f32 %v51_v16, %v49_v17 }
  0x26   :  { %v53_v19 = vmul.f32 1.442695, %v52_v18 }
  0x28   :  { %72 = vpow2.f32 %v53_v19 }
  0x32   :  { %v73_v20 = vpop.eup %72 }
  0x33   :  { %55 = vst [vmem:[%s130_s3] sm:$0xff] %v73_v20 }
  0x34   :  { %60 = vsyncpa [#allocation4], 1 }

</bundles_post_ra>
